<compile_context>
chip_gen: v5e
topology: v5e:2x2
jax: 0.10.0
libtpu: 0.0.40
codegen_flags: <defaults>
</compile_context>

<pallas_src>
import math
import jax
import jax.numpy as jnp
from jax import lax
from jax.experimental import pallas as pl
from jax.experimental.pallas import tpu as pltpu

LN_EPS = 1e-5
INV_SQRT2 = 0.7071067811865476


def _layernorm(x, gamma, beta):
    # PyTorch LayerNorm: biased variance, eps inside sqrt (fp32 math).
    mean = jnp.mean(x, axis=-1, keepdims=True)
    var = jnp.mean((x - mean) ** 2, axis=-1, keepdims=True)
    return (x - mean) * lax.rsqrt(var + LN_EPS) * gamma + beta


def _gelu_exact(x):
    # nn.GELU() default = exact erf-based GELU.
    return 0.5 * x * (1.0 + lax.erf(x * INV_SQRT2))


def make_encoder_kernel(num_heads):
    def encoder_kernel(x_ref, wqkv_ref, bqkv_ref, wo_ref, bo_ref,
                       g1_ref, beta1_ref, w1_ref, b1_ref,
                       w2_ref, b2_ref, g2_ref, beta2_ref, o_ref):
        x = x_ref[0].astype(jnp.float32)                         # (S, E) residual path in fp32
        S, E = x.shape
        H = num_heads
        Dh = E // H

        x_bf = x.astype(jnp.bfloat16)

        # ---- Multi-head self-attention -------------------------------------
        # Fused QKV projection: bf16 operands, fp32 accumulate; weights pre-transposed (E, 3E)
        # with 1/sqrt(Dh) already folded into the Q columns + bias on the host.
        qkv = jnp.dot(x_bf, wqkv_ref[...],
                      preferred_element_type=jnp.float32) + bqkv_ref[...]     # (S, 3E) fp32

        q = qkv[:, 0 * E:1 * E]
        k = qkv[:, 1 * E:2 * E]
        v = qkv[:, 2 * E:3 * E]

        # Head-batched attention on (H, S, Dh) operands (no per-head loop / concat).
        qh = jnp.transpose(q.reshape(S, H, Dh), (1, 0, 2)).astype(jnp.bfloat16)
        kh = jnp.transpose(k.reshape(S, H, Dh), (1, 0, 2)).astype(jnp.bfloat16)
        vh = jnp.transpose(v.reshape(S, H, Dh), (1, 0, 2)).astype(jnp.bfloat16)

        scores = jnp.einsum("hqd,hkd->hqk", qh, kh,
                            preferred_element_type=jnp.float32)               # (H, S, S) fp32
        scores = scores - jnp.max(scores, axis=-1, keepdims=True)
        p = jnp.exp(scores)
        p = p * pl.reciprocal(jnp.sum(p, axis=-1, keepdims=True), approx=True)

        ctx = jnp.einsum("hqk,hkd->hqd", p.astype(jnp.bfloat16), vh,
                         preferred_element_type=jnp.float32)                  # (H, S, Dh)
        attn = jnp.transpose(ctx, (1, 0, 2)).reshape(S, E)

        attn = jnp.dot(attn.astype(jnp.bfloat16), wo_ref[...],
                       preferred_element_type=jnp.float32) + bo_ref[...]      # (S, E)

        # residual + LayerNorm 1 (fp32)
        res1 = x + attn
        n1 = _layernorm(res1, g1_ref[...], beta1_ref[...])

        # ---- FFN ------------------------------------------------------------
        h1 = jnp.dot(n1.astype(jnp.bfloat16), w1_ref[...],
                     preferred_element_type=jnp.float32) + b1_ref[...]        # (S, F)
        h1 = _gelu_exact(h1)
        ffn = jnp.dot(h1.astype(jnp.bfloat16), w2_ref[...],
                      preferred_element_type=jnp.float32) + b2_ref[...]       # (S, E)
        # Dropout(p=0.5) in eval mode == identity.

        # residual + LayerNorm 2 (fp32)
        res2 = n1 + ffn
        n2 = _layernorm(res2, g2_ref[...], beta2_ref[...])

        o_ref[0] = n2.astype(o_ref.dtype)

    return encoder_kernel


def transformer_encoder_block(x_sbe, params, num_heads):
    """x_sbe: (S, B, E) float32 (PyTorch nn.MultiheadAttention layout)."""
    S, B, E = x_sbe.shape
    (wqkv, bqkv, wo, bo, g1, beta1, w1, bias1, w2, bias2, g2, beta2) = params
    F = w1.shape[0]
    Dh = E // num_heads
    scale = 1.0 / math.sqrt(Dh)

    # Fold the 1/sqrt(Dh) attention scale into the Q slice of the fused QKV
    # weight/bias (host-side, once) so the kernel does no scaling at all.
    q_scale_cols = jnp.concatenate(
        [jnp.full((3 * E,), scale, jnp.float32).at[E:].set(1.0)])
    wqkv_scaled = wqkv * q_scale_cols[:, None]                   # (3E, E) rows: q rows scaled
    bqkv_scaled = bqkv * q_scale_cols[None, :]                   # (1, 3E)

    # Pre-transpose loop-invariant weights once outside the kernel and cast the
    # matmul operands to bf16 (MXU-native). Biases / LN params stay fp32.
    wqkv_t = wqkv_scaled.T.astype(jnp.bfloat16)  # (E, 3E)
    wo_t = wo.T.astype(jnp.bfloat16)             # (E, E)
    w1_t = w1.T.astype(jnp.bfloat16)             # (E, F)
    w2_t = w2.T.astype(jnp.bfloat16)             # (F, E)

    x_bse = jnp.transpose(x_sbe, (1, 0, 2))                      # (B, S, E)

    def full_spec(shape):
        nd = len(shape)
        return pl.BlockSpec(shape, lambda b, _nd=nd: (0,) * _nd)

    out = pl.pallas_call(
        make_encoder_kernel(num_heads),
        out_shape=jax.ShapeDtypeStruct((B, S, E), x_bse.dtype),
        grid_spec=pltpu.PrefetchScalarGridSpec(
            num_scalar_prefetch=0,
            grid=(B,),
            in_specs=[
                pl.BlockSpec((1, S, E), lambda b: (b, 0, 0)),    # x
                full_spec((E, 3 * E)),                           # in_proj_weight^T (bf16, q-scaled)
                full_spec((1, 3 * E)),                           # in_proj_bias (q-scaled)
                full_spec((E, E)),                               # out_proj.weight^T (bf16)
                full_spec((1, E)),                               # out_proj.bias
                full_spec((1, E)),                               # norm1.weight
                full_spec((1, E)),                               # norm1.bias
                full_spec((E, F)),                               # ffn linear1.weight^T (bf16)
                full_spec((1, F)),                               # ffn linear1.bias
                full_spec((F, E)),                               # ffn linear2.weight^T (bf16)
                full_spec((1, E)),                               # ffn linear2.bias
                full_spec((1, E)),                               # norm2.weight
                full_spec((1, E)),                               # norm2.bias
            ],
            out_specs=pl.BlockSpec((1, S, E), lambda b: (b, 0, 0)),
        ),
        compiler_params=pltpu.CompilerParams(
            dimension_semantics=("parallel",),
            vmem_limit_bytes=32 * 1024 * 1024,   # safe on v5e/v6e/v7x; toy shapes need far less
        ),
    )(x_bse, wqkv_t, bqkv_scaled, wo_t, bo, g1, beta1, w1_t, bias1,
      w2_t, bias2, g2, beta2)

    return jnp.transpose(out, (1, 0, 2))                         # back to (S, B, E)


def init_params(key, embed_dim, num_heads, ffn_hidden_dim):
    E, F = embed_dim, ffn_hidden_dim
    ks = jax.random.split(key, 8)
    scale = 0.02
    wqkv = scale * jax.random.normal(ks[0], (3 * E, E), jnp.float32)
    bqkv = scale * jax.random.normal(ks[1], (1, 3 * E), jnp.float32)
    wo = scale * jax.random.normal(ks[2], (E, E), jnp.float32)
    bo = scale * jax.random.normal(ks[3], (1, E), jnp.float32)
    g1 = jnp.ones((1, E), jnp.float32)
    beta1 = jnp.zeros((1, E), jnp.float32)
    w1 = scale * jax.random.normal(ks[4], (F, E), jnp.float32)
    bias1 = scale * jax.random.normal(ks[5], (1, F), jnp.float32)
    w2 = scale * jax.random.normal(ks[6], (E, F), jnp.float32)
    bias2 = scale * jax.random.normal(ks[7], (1, E), jnp.float32)
    g2 = jnp.ones((1, E), jnp.float32)
    beta2 = jnp.zeros((1, E), jnp.float32)
    return (wqkv, bqkv, wo, bo, g1, beta1, w1, bias1, w2, bias2, g2, beta2)


def reference(x_sbe, params, num_heads):
    """Pure-JAX fp32 reference of the same forward pass (eval mode)."""
    (wqkv, bqkv, wo, bo, g1, beta1, w1, bias1, w2, bias2, g2, beta2) = params
    S, B, E = x_sbe.shape
    H = num_heads
    Dh = E // H

    def ln(x, g, b):
        m = x.mean(-1, keepdims=True)
        v = ((x - m) ** 2).mean(-1, keepdims=True)
        return (x - m) / jnp.sqrt(v + LN_EPS) * g + b

    x = jnp.transpose(x_sbe, (1, 0, 2))                          # (B, S, E)
    qkv = x @ wqkv.T + bqkv[0]
    q, k, v = jnp.split(qkv, 3, axis=-1)

    def split_heads(t):
        return jnp.transpose(t.reshape(B, S, H, Dh), (0, 2, 1, 3))   # (B, H, S, Dh)

    qh, kh, vh = split_heads(q), split_heads(k), split_heads(v)
    sc = jnp.einsum("bhqd,bhkd->bhqk", qh, kh) / math.sqrt(Dh)
    p = jax.nn.softmax(sc, axis=-1)
    oh = jnp.einsum("bhqk,bhkd->bhqd", p, vh)
    attn = jnp.transpose(oh, (0, 2, 1, 3)).reshape(B, S, E) @ wo.T + bo[0]

    n1 = ln(x + attn, g1[0], beta1[0])
    h1 = n1 @ w1.T + bias1[0]
    h1 = 0.5 * h1 * (1.0 + lax.erf(h1 / jnp.sqrt(2.0)))
    ffn = h1 @ w2.T + bias2[0]
    n2 = ln(n1 + ffn, g2[0], beta2[0])
    return jnp.transpose(n2, (1, 0, 2))


if __name__ == "__main__":
    S, B, E, H, F = 8, 2, 32, 4, 64
    key = jax.random.PRNGKey(0)
    kx, kp = jax.random.split(key)
    x = jax.random.normal(kx, (S, B, E), jnp.float32)
    params = init_params(kp, E, H, F)

    out = transformer_encoder_block(x, params, H)
    out = jax.block_until_ready(out)

    ref = jax.block_until_ready(reference(x, params, H))
    assert out.shape == (S, B, E)
    # bf16 MXU operands + approx reciprocal loosen tolerance vs. the fp32 reference.
    assert jnp.allclose(out, ref, atol=5e-2, rtol=5e-2), "mismatch vs reference"

    print("KERNEL_OK")
</pallas_src>

<mosaic_0001>
module attributes {stable_mosaic.version = 11 : i64} {
  func.func @encoder_kernel(%arg0: i32, %arg1: memref<1x8x32xf32, #tpu.memory_space<vmem>>, %arg2: memref<32x96xbf16, #tpu.memory_space<vmem>>, %arg3: memref<1x96xf32, #tpu.memory_space<vmem>>, %arg4: memref<32x32xbf16, #tpu.memory_space<vmem>>, %arg5: memref<1x32xf32, #tpu.memory_space<vmem>>, %arg6: memref<1x32xf32, #tpu.memory_space<vmem>>, %arg7: memref<1x32xf32, #tpu.memory_space<vmem>>, %arg8: memref<32x64xbf16, #tpu.memory_space<vmem>>, %arg9: memref<1x64xf32, #tpu.memory_space<vmem>>, %arg10: memref<64x32xbf16, #tpu.memory_space<vmem>>, %arg11: memref<1x32xf32, #tpu.memory_space<vmem>>, %arg12: memref<1x32xf32, #tpu.memory_space<vmem>>, %arg13: memref<1x32xf32, #tpu.memory_space<vmem>>, %arg14: memref<1x8x32xf32, #tpu.memory_space<vmem>>) attributes {dimension_semantics = [#tpu.dimension_semantics<parallel>], iteration_bounds = array<i64: 2>, scalar_prefetch = 0 : i64, scratch_operands = 0 : i64, tpu.core_type = #tpu.core_type<tc>, window_params = [{transform_indices = @transform_0, window_bounds = array<i64: 1, 8, 32>}, {pipeline_mode = #tpu.pipeline_mode<synchronous>, transform_indices = @transform_1, window_bounds = array<i64: 32, 96>}, {pipeline_mode = #tpu.pipeline_mode<synchronous>, transform_indices = @transform_2, window_bounds = array<i64: 1, 96>}, {pipeline_mode = #tpu.pipeline_mode<synchronous>, transform_indices = @transform_3, window_bounds = array<i64: 32, 32>}, {pipeline_mode = #tpu.pipeline_mode<synchronous>, transform_indices = @transform_4, window_bounds = array<i64: 1, 32>}, {pipeline_mode = #tpu.pipeline_mode<synchronous>, transform_indices = @transform_5, window_bounds = array<i64: 1, 32>}, {pipeline_mode = #tpu.pipeline_mode<synchronous>, transform_indices = @transform_6, window_bounds = array<i64: 1, 32>}, {pipeline_mode = #tpu.pipeline_mode<synchronous>, transform_indices = @transform_7, window_bounds = array<i64: 32, 64>}, {pipeline_mode = #tpu.pipeline_mode<synchronous>, transform_indices = @transform_8, window_bounds = array<i64: 1, 64>}, {pipeline_mode = #tpu.pipeline_mode<synchronous>, transform_indices = @transform_9, window_bounds = array<i64: 64, 32>}, {pipeline_mode = #tpu.pipeline_mode<synchronous>, transform_indices = @transform_10, window_bounds = array<i64: 1, 32>}, {pipeline_mode = #tpu.pipeline_mode<synchronous>, transform_indices = @transform_11, window_bounds = array<i64: 1, 32>}, {pipeline_mode = #tpu.pipeline_mode<synchronous>, transform_indices = @transform_12, window_bounds = array<i64: 1, 32>}, {transform_indices = @transform_13, window_bounds = array<i64: 1, 8, 32>}]} {
    %c0 = arith.constant 0 : index
    %c0_0 = arith.constant 0 : index
    %c0_1 = arith.constant 0 : index
    %0 = vector.load %arg1[%c0, %c0_0, %c0_1] : memref<1x8x32xf32, #tpu.memory_space<vmem>>, vector<1x8x32xf32>
    %1 = vector.shape_cast %0 : vector<1x8x32xf32> to vector<8x32xf32>
    %2 = arith.truncf %1 : vector<8x32xf32> to vector<8x32xbf16>
    %c0_2 = arith.constant 0 : index
    %c0_3 = arith.constant 0 : index
    %3 = vector.load %arg2[%c0_2, %c0_3] : memref<32x96xbf16, #tpu.memory_space<vmem>>, vector<32x96xbf16>
    %cst = arith.constant dense<0.000000e+00> : vector<8x96xf32>
    %4 = tpu.matmul %2, %3, %cst {dimension_numbers = #tpu.dot_dimension_numbers<[1], [0], [0], [1], [0, 0, 1, 1], [], []>} : vector<8x32xbf16>, vector<32x96xbf16>, vector<8x96xf32> -> vector<8x96xf32>
    %c0_4 = arith.constant 0 : index
    %c0_5 = arith.constant 0 : index
    %5 = vector.load %arg3[%c0_4, %c0_5] : memref<1x96xf32, #tpu.memory_space<vmem>>, vector<1x96xf32>
    %6 = vector.broadcast %5 : vector<1x96xf32> to vector<8x96xf32>
    %7 = arith.addf %4, %6 : vector<8x96xf32>
    %8 = vector.extract_strided_slice %7 {offsets = [0, 0], sizes = [8, 32], strides = [1, 1]} : vector<8x96xf32> to vector<8x32xf32>
    %9 = vector.extract_strided_slice %7 {offsets = [0, 32], sizes = [8, 32], strides = [1, 1]} : vector<8x96xf32> to vector<8x32xf32>
    %10 = vector.extract_strided_slice %7 {offsets = [0, 64], sizes = [8, 32], strides = [1, 1]} : vector<8x96xf32> to vector<8x32xf32>
    %11 = vector.shape_cast %8 : vector<8x32xf32> to vector<8x4x8xf32>
    %12 = tpu.transpose %11, [1, 0, 2] : vector<8x4x8xf32> -> vector<4x8x8xf32>
    %13 = arith.truncf %12 : vector<4x8x8xf32> to vector<4x8x8xbf16>
    %14 = vector.shape_cast %9 : vector<8x32xf32> to vector<8x4x8xf32>
    %15 = tpu.transpose %14, [1, 0, 2] : vector<8x4x8xf32> -> vector<4x8x8xf32>
    %16 = arith.truncf %15 : vector<4x8x8xf32> to vector<4x8x8xbf16>
    %17 = vector.shape_cast %10 : vector<8x32xf32> to vector<8x4x8xf32>
    %18 = tpu.transpose %17, [1, 0, 2] : vector<8x4x8xf32> -> vector<4x8x8xf32>
    %19 = arith.truncf %18 : vector<4x8x8xf32> to vector<4x8x8xbf16>
    "tpu.trace_start"() <{level = 10 : i32, message = "hqd,hkd->hqk"}> : () -> ()
    %cst_6 = arith.constant dense<0.000000e+00> : vector<4x8x8xf32>
    %20 = tpu.matmul %13, %16, %cst_6 {dimension_numbers = #tpu.dot_dimension_numbers<[2], [2], [1], [1], [0, 0, 0, 1, 1, 1], [0], [0]>} : vector<4x8x8xbf16>, vector<4x8x8xbf16>, vector<4x8x8xf32> -> vector<4x8x8xf32>
    "tpu.trace_stop"() : () -> ()
    %cst_7 = arith.constant dense<0xFF800000> : vector<4x8xf32>
    %21 = vector.multi_reduction <maximumf>, %20, %cst_7 [2] : vector<4x8x8xf32> to vector<4x8xf32>
    %22 = vector.shape_cast %21 : vector<4x8xf32> to vector<4x8x1xf32>
    %23 = vector.broadcast %22 : vector<4x8x1xf32> to vector<4x8x8xf32>
    %24 = arith.subf %20, %23 : vector<4x8x8xf32>
    %25 = math.exp %24 : vector<4x8x8xf32>
    %cst_8 = arith.constant dense<0.000000e+00> : vector<4x8xf32>
    %26 = vector.multi_reduction <add>, %25, %cst_8 [2] : vector<4x8x8xf32> to vector<4x8xf32>
    %27 = vector.shape_cast %26 : vector<4x8xf32> to vector<4x8x1xf32>
    %28 = tpu.reciprocal %27 {approx = true} : vector<4x8x1xf32> -> vector<4x8x1xf32>
    %29 = vector.broadcast %28 : vector<4x8x1xf32> to vector<4x8x8xf32>
    %30 = arith.mulf %25, %29 : vector<4x8x8xf32>
    %31 = arith.truncf %30 : vector<4x8x8xf32> to vector<4x8x8xbf16>
    "tpu.trace_start"() <{level = 10 : i32, message = "hqk,hkd->hqd"}> : () -> ()
    %cst_9 = arith.constant dense<0.000000e+00> : vector<4x8x8xf32>
    %32 = tpu.matmul %31, %19, %cst_9 {dimension_numbers = #tpu.dot_dimension_numbers<[2], [1], [1], [2], [0, 0, 0, 1, 1, 2], [0], [0]>} : vector<4x8x8xbf16>, vector<4x8x8xbf16>, vector<4x8x8xf32> -> vector<4x8x8xf32>
    "tpu.trace_stop"() : () -> ()
    %33 = tpu.transpose %32, [1, 0, 2] : vector<4x8x8xf32> -> vector<8x4x8xf32>
    %34 = vector.shape_cast %33 : vector<8x4x8xf32> to vector<8x32xf32>
    %35 = arith.truncf %34 : vector<8x32xf32> to vector<8x32xbf16>
    %c0_10 = arith.constant 0 : index
    %c0_11 = arith.constant 0 : index
    %36 = vector.load %arg4[%c0_10, %c0_11] : memref<32x32xbf16, #tpu.memory_space<vmem>>, vector<32x32xbf16>
    %cst_12 = arith.constant dense<0.000000e+00> : vector<8x32xf32>
    %37 = tpu.matmul %35, %36, %cst_12 {dimension_numbers = #tpu.dot_dimension_numbers<[1], [0], [0], [1], [0, 0, 1, 1], [], []>} : vector<8x32xbf16>, vector<32x32xbf16>, vector<8x32xf32> -> vector<8x32xf32>
    %c0_13 = arith.constant 0 : index
    %c0_14 = arith.constant 0 : index
    %38 = vector.load %arg5[%c0_13, %c0_14] : memref<1x32xf32, #tpu.memory_space<vmem>>, vector<1x32xf32>
    %39 = vector.broadcast %38 : vector<1x32xf32> to vector<8x32xf32>
    %40 = arith.addf %37, %39 : vector<8x32xf32>
    %41 = arith.addf %1, %40 : vector<8x32xf32>
    %c0_15 = arith.constant 0 : index
    %c0_16 = arith.constant 0 : index
    %42 = vector.load %arg6[%c0_15, %c0_16] : memref<1x32xf32, #tpu.memory_space<vmem>>, vector<1x32xf32>
    %c0_17 = arith.constant 0 : index
    %c0_18 = arith.constant 0 : index
    %43 = vector.load %arg7[%c0_17, %c0_18] : memref<1x32xf32, #tpu.memory_space<vmem>>, vector<1x32xf32>
    %cst_19 = arith.constant dense<0.000000e+00> : vector<8xf32>
    %44 = vector.multi_reduction <add>, %41, %cst_19 [1] : vector<8x32xf32> to vector<8xf32>
    %45 = vector.shape_cast %44 : vector<8xf32> to vector<8x1xf32>
    %cst_20 = arith.constant 3.200000e+01 : f32
    %46 = vector.broadcast %cst_20 : f32 to vector<8x1xf32>
    %47 = arith.divf %45, %46 : vector<8x1xf32>
    %48 = vector.broadcast %47 : vector<8x1xf32> to vector<8x32xf32>
    %49 = arith.subf %41, %48 : vector<8x32xf32>
    %50 = arith.mulf %49, %49 : vector<8x32xf32>
    %cst_21 = arith.constant dense<0.000000e+00> : vector<8xf32>
    %51 = vector.multi_reduction <add>, %50, %cst_21 [1] : vector<8x32xf32> to vector<8xf32>
    %52 = vector.shape_cast %51 : vector<8xf32> to vector<8x1xf32>
    %cst_22 = arith.constant 3.200000e+01 : f32
    %53 = vector.broadcast %cst_22 : f32 to vector<8x1xf32>
    %54 = arith.divf %52, %53 : vector<8x1xf32>
    %55 = vector.broadcast %47 : vector<8x1xf32> to vector<8x32xf32>
    %56 = arith.subf %41, %55 : vector<8x32xf32>
    %cst_23 = arith.constant 9.99999974E-6 : f32
    %57 = vector.broadcast %cst_23 : f32 to vector<8x1xf32>
    %58 = arith.addf %54, %57 : vector<8x1xf32>
    %59 = math.rsqrt %58 : vector<8x1xf32>
    %60 = vector.broadcast %59 : vector<8x1xf32> to vector<8x32xf32>
    %61 = arith.mulf %56, %60 : vector<8x32xf32>
    %62 = vector.broadcast %42 : vector<1x32xf32> to vector<8x32xf32>
    %63 = arith.mulf %61, %62 : vector<8x32xf32>
    %64 = vector.broadcast %43 : vector<1x32xf32> to vector<8x32xf32>
    %65 = arith.addf %63, %64 : vector<8x32xf32>
    %66 = arith.truncf %65 : vector<8x32xf32> to vector<8x32xbf16>
    %c0_24 = arith.constant 0 : index
    %c0_25 = arith.constant 0 : index
    %67 = vector.load %arg8[%c0_24, %c0_25] : memref<32x64xbf16, #tpu.memory_space<vmem>>, vector<32x64xbf16>
    %cst_26 = arith.constant dense<0.000000e+00> : vector<8x64xf32>
    %68 = tpu.matmul %66, %67, %cst_26 {dimension_numbers = #tpu.dot_dimension_numbers<[1], [0], [0], [1], [0, 0, 1, 1], [], []>} : vector<8x32xbf16>, vector<32x64xbf16>, vector<8x64xf32> -> vector<8x64xf32>
    %c0_27 = arith.constant 0 : index
    %c0_28 = arith.constant 0 : index
    %69 = vector.load %arg9[%c0_27, %c0_28] : memref<1x64xf32, #tpu.memory_space<vmem>>, vector<1x64xf32>
    %70 = vector.broadcast %69 : vector<1x64xf32> to vector<8x64xf32>
    %71 = arith.addf %68, %70 : vector<8x64xf32>
    %cst_29 = arith.constant 5.000000e-01 : f32
    %72 = vector.broadcast %cst_29 : f32 to vector<8x64xf32>
    %73 = arith.mulf %72, %71 : vector<8x64xf32>
    %cst_30 = arith.constant 0.707106769 : f32
    %74 = vector.broadcast %cst_30 : f32 to vector<8x64xf32>
    %75 = arith.mulf %71, %74 : vector<8x64xf32>
    %76 = math.erf %75 : vector<8x64xf32>
    %cst_31 = arith.constant 1.000000e+00 : f32
    %77 = vector.broadcast %cst_31 : f32 to vector<8x64xf32>
    %78 = arith.addf %77, %76 : vector<8x64xf32>
    %79 = arith.mulf %73, %78 : vector<8x64xf32>
    %80 = arith.truncf %79 : vector<8x64xf32> to vector<8x64xbf16>
    %c0_32 = arith.constant 0 : index
    %c0_33 = arith.constant 0 : index
    %81 = vector.load %arg10[%c0_32, %c0_33] : memref<64x32xbf16, #tpu.memory_space<vmem>>, vector<64x32xbf16>
    %cst_34 = arith.constant dense<0.000000e+00> : vector<8x32xf32>
    %82 = tpu.matmul %80, %81, %cst_34 {dimension_numbers = #tpu.dot_dimension_numbers<[1], [0], [0], [1], [0, 0, 1, 1], [], []>} : vector<8x64xbf16>, vector<64x32xbf16>, vector<8x32xf32> -> vector<8x32xf32>
    %c0_35 = arith.constant 0 : index
    %c0_36 = arith.constant 0 : index
    %83 = vector.load %arg11[%c0_35, %c0_36] : memref<1x32xf32, #tpu.memory_space<vmem>>, vector<1x32xf32>
    %84 = vector.broadcast %83 : vector<1x32xf32> to vector<8x32xf32>
    %85 = arith.addf %82, %84 : vector<8x32xf32>
    %86 = arith.addf %65, %85 : vector<8x32xf32>
    %c0_37 = arith.constant 0 : index
    %c0_38 = arith.constant 0 : index
    %87 = vector.load %arg12[%c0_37, %c0_38] : memref<1x32xf32, #tpu.memory_space<vmem>>, vector<1x32xf32>
    %c0_39 = arith.constant 0 : index
    %c0_40 = arith.constant 0 : index
    %88 = vector.load %arg13[%c0_39, %c0_40] : memref<1x32xf32, #tpu.memory_space<vmem>>, vector<1x32xf32>
    %cst_41 = arith.constant dense<0.000000e+00> : vector<8xf32>
    %89 = vector.multi_reduction <add>, %86, %cst_41 [1] : vector<8x32xf32> to vector<8xf32>
    %90 = vector.shape_cast %89 : vector<8xf32> to vector<8x1xf32>
    %cst_42 = arith.constant 3.200000e+01 : f32
    %91 = vector.broadcast %cst_42 : f32 to vector<8x1xf32>
    %92 = arith.divf %90, %91 : vector<8x1xf32>
    %93 = vector.broadcast %92 : vector<8x1xf32> to vector<8x32xf32>
    %94 = arith.subf %86, %93 : vector<8x32xf32>
    %95 = arith.mulf %94, %94 : vector<8x32xf32>
    %cst_43 = arith.constant dense<0.000000e+00> : vector<8xf32>
    %96 = vector.multi_reduction <add>, %95, %cst_43 [1] : vector<8x32xf32> to vector<8xf32>
    %97 = vector.shape_cast %96 : vector<8xf32> to vector<8x1xf32>
    %cst_44 = arith.constant 3.200000e+01 : f32
    %98 = vector.broadcast %cst_44 : f32 to vector<8x1xf32>
    %99 = arith.divf %97, %98 : vector<8x1xf32>
    %100 = vector.broadcast %92 : vector<8x1xf32> to vector<8x32xf32>
    %101 = arith.subf %86, %100 : vector<8x32xf32>
    %cst_45 = arith.constant 9.99999974E-6 : f32
    %102 = vector.broadcast %cst_45 : f32 to vector<8x1xf32>
    %103 = arith.addf %99, %102 : vector<8x1xf32>
    %104 = math.rsqrt %103 : vector<8x1xf32>
    %105 = vector.broadcast %104 : vector<8x1xf32> to vector<8x32xf32>
    %106 = arith.mulf %101, %105 : vector<8x32xf32>
    %107 = vector.broadcast %87 : vector<1x32xf32> to vector<8x32xf32>
    %108 = arith.mulf %106, %107 : vector<8x32xf32>
    %109 = vector.broadcast %88 : vector<1x32xf32> to vector<8x32xf32>
    %110 = arith.addf %108, %109 : vector<8x32xf32>
    %c0_46 = arith.constant 0 : index
    %c0_47 = arith.constant 0 : index
    %c0_48 = arith.constant 0 : index
    %111 = vector.load %arg14[%c0_46, %c0_47, %c0_48] : memref<1x8x32xf32, #tpu.memory_space<vmem>>, vector<1x8x32xf32>
    %112 = vector.shape_cast %111 : vector<1x8x32xf32> to vector<8x32xf32>
    %113 = vector.shape_cast %110 : vector<8x32xf32> to vector<1x8x32xf32>
    tpu.vector_store %arg14[%c0_46, %c0_47, %c0_48], %113 {strides = array<i32>} : memref<1x8x32xf32, #tpu.memory_space<vmem>>, vector<1x8x32xf32>,
    return
  }
  func.func @transform_0(%arg0: i32) -> (i32, i32, i32) {
    %c0_i32 = arith.constant 0 : i32
    %c0_i32_0 = arith.constant 0 : i32
    %c0_i32_1 = arith.constant 0 : i32
    return %arg0, %c0_i32, %c0_i32_0 : i32, i32, i32
  }
  func.func @transform_1(%arg0: i32) -> (i32, i32) {
    %c0_i32 = arith.constant 0 : i32
    %c0_i32_0 = arith.constant 0 : i32
    %c0_i32_1 = arith.constant 0 : i32
    return %c0_i32, %c0_i32_0 : i32, i32
  }
  func.func @transform_2(%arg0: i32) -> (i32, i32) {
    %c0_i32 = arith.constant 0 : i32
    %c0_i32_0 = arith.constant 0 : i32
    %c0_i32_1 = arith.constant 0 : i32
    return %c0_i32, %c0_i32_0 : i32, i32
  }
  func.func @transform_3(%arg0: i32) -> (i32, i32) {
    %c0_i32 = arith.constant 0 : i32
    %c0_i32_0 = arith.constant 0 : i32
    %c0_i32_1 = arith.constant 0 : i32
    return %c0_i32, %c0_i32_0 : i32, i32
  }
  func.func @transform_4(%arg0: i32) -> (i32, i32) {
    %c0_i32 = arith.constant 0 : i32
    %c0_i32_0 = arith.constant 0 : i32
    %c0_i32_1 = arith.constant 0 : i32
    return %c0_i32, %c0_i32_0 : i32, i32
  }
  func.func @transform_5(%arg0: i32) -> (i32, i32) {
    %c0_i32 = arith.constant 0 : i32
    %c0_i32_0 = arith.constant 0 : i32
    %c0_i32_1 = arith.constant 0 : i32
    return %c0_i32, %c0_i32_0 : i32, i32
  }
  func.func @transform_6(%arg0: i32) -> (i32, i32) {
    %c0_i32 = arith.constant 0 : i32
    %c0_i32_0 = arith.constant 0 : i32
    %c0_i32_1 = arith.constant 0 : i32
    return %c0_i32, %c0_i32_0 : i32, i32
  }
  func.func @transform_7(%arg0: i32) -> (i32, i32) {
    %c0_i32 = arith.constant 0 : i32
    %c0_i32_0 = arith.constant 0 : i32
    %c0_i32_1 = arith.constant 0 : i32
    return %c0_i32, %c0_i32_0 : i32, i32
  }
  func.func @transform_8(%arg0: i32) -> (i32, i32) {
    %c0_i32 = arith.constant 0 : i32
    %c0_i32_0 = arith.constant 0 : i32
    %c0_i32_1 = arith.constant 0 : i32
    return %c0_i32, %c0_i32_0 : i32, i32
  }
  func.func @transform_9(%arg0: i32) -> (i32, i32) {
    %c0_i32 = arith.constant 0 : i32
    %c0_i32_0 = arith.constant 0 : i32
    %c0_i32_1 = arith.constant 0 : i32
    return %c0_i32, %c0_i32_0 : i32, i32
  }
  func.func @transform_10(%arg0: i32) -> (i32, i32) {
    %c0_i32 = arith.constant 0 : i32
    %c0_i32_0 = arith.constant 0 : i32
    %c0_i32_1 = arith.constant 0 : i32
    return %c0_i32, %c0_i32_0 : i32, i32
  }
  func.func @transform_11(%arg0: i32) -> (i32, i32) {
    %c0_i32 = arith.constant 0 : i32
    %c0_i32_0 = arith.constant 0 : i32
    %c0_i32_1 = arith.constant 0 : i32
    return %c0_i32, %c0_i32_0 : i32, i32
  }
  func.func @transform_12(%arg0: i32) -> (i32, i32) {
    %c0_i32 = arith.constant 0 : i32
    %c0_i32_0 = arith.constant 0 : i32
    %c0_i32_1 = arith.constant 0 : i32
    return %c0_i32, %c0_i32_0 : i32, i32
  }
  func.func @transform_13(%arg0: i32) -> (i32, i32, i32) {
    %c0_i32 = arith.constant 0 : i32
    %c0_i32_0 = arith.constant 0 : i32
    %c0_i32_1 = arith.constant 0 : i32
    return %arg0, %c0_i32, %c0_i32_0 : i32, i32, i32
  }
}

</mosaic_0001>

<bundles_post_ra>
// kernel: tpu_custom_call.1
= control target key start
LH: loop header
LB: loop body
LE: loop exit
PB: predicated region body
PF: predicated region fallthrough
CT: control target
= control target key end

     0   :  { %s2284_s0 = inlined_call_operand.vmem [shape: f32[2,8,32], index: 0, kind: input, shape index: {}]   ;;  %s2285_s1 = inlined_call_operand.vmem [shape: bf16[32,96], index: 1, kind: input, shape index: {}]   ;;  %s2286_s2 = inlined_call_operand.vmem [shape: f32[1,96], index: 2, kind: input, shape index: {}]   ;;  %s2287_s3 = inlined_call_operand.vmem [shape: bf16[32,32], index: 3, kind: input, shape index: {}]   ;;  %s2288_s4 = inlined_call_operand.vmem [shape: f32[1,32], index: 4, kind: input, shape index: {}]   ;;  %s2289_s5 = inlined_call_operand.vmem [shape: f32[1,32], index: 5, kind: input, shape index: {}]   ;;  %s2290_s6 = inlined_call_operand.vmem [shape: f32[1,32], index: 6, kind: input, shape index: {}]   ;;  %s2291_s7 = inlined_call_operand.hbm [shape: bf16[32,64], index: 7, kind: input, shape index: {}]   ;;  %s2292_s8 = inlined_call_operand.vmem [shape: f32[1,64], index: 8, kind: input, shape index: {}]   ;;  %s2293_s9 = inlined_call_operand.vmem [shape: bf16[64,32], index: 9, kind: input, shape index: {}]   ;;  %s2294_s10 = inlined_call_operand.vmem [shape: f32[1,32], index: 10, kind: input, shape index: {}]   ;;  %s2295_s11 = inlined_call_operand.vmem [shape: f32[1,32], index: 11, kind: input, shape index: {}]   ;;  %s2296_s12 = inlined_call_operand.vmem [shape: f32[1,32], index: 12, kind: input, shape index: {}]   ;;  %s2297_s13 = inlined_call_operand.hbm [shape: f32[2,8,32], index: 13, kind: output, shape index: {}]  }
   0x1   :  { %2299 = sst [smem:[#allocation10_spill]] %s2284_s0 }
   0x2   :  { %2300 = sst [smem:[#allocation11_spill]] %s2291_s7 }
   0x3   :  { %18 = vsyncpa [#allocation3], 0 }
   0x4   :  { %19 = vsyncpa [#allocation4], 0 }
   0x5   :  { %21 = vsyncpa [#allocation4 + $0x1], 0  ;;  %s1904_s25 = smov 0   ;;  %s1906_s26 = smov 0  }
   0x6   :  { %s1908_s27 = smov 0   ;;  %s1910_s28 = smov 0  }
   0x7 LB: > { %2301 = sst [smem:[#allocation8_spill]] %s1814_s27  ;;  %s1925_s29 = sadd.s32 4294967295, %s1818_s28   ;;  %s1818_s28 = sphi %s1910_s28, %s2311_s28   ;;  %s1814_s27 = sphi %s1908_s27, %s2308_s27   ;;  %s1810_s26 = sphi %s1906_s26, %s2310_s26   ;;  %s1806_s25 = sphi %s1904_s25, %s2309_s25  }
   0x8   : > { %s1532_s30 = sadd.s32 4294967294, %s1818_s28   ;;  %s1929_s14 = sadd.s32 1, %s1818_s28  }
   0x9   : > { %s312_s15 = sadd.s32 1, %s1814_s27  ;;  %s309_s16 = ssub.s32 %s1818_s28, %s1929_s14 }
   0xa   : > { %p322_p0 = scmp.ne.s32.totalorder %s1814_s27, %s1810_s26  ;;  %p310_p1 = scmp.eq.s32.totalorder %s309_s16, 0 }
   0xb   : > { %p323_p2 = scmp.eq.s32.totalorder %s1925_s29, 1  ;;  %p328_p3 = scmp.ne.s32.totalorder %s1810_s26, %s1806_s25 }
   0xc   : > { %p329_p4 = scmp.eq.s32.totalorder %s1532_s30, 1  ;;  %p1533_p7 = scmp.ge.s32.totalorder %s1818_s28, 1 }
   0xd   : > { %s1940_s17 = scalar_select %p310_p1, %s1814_s27, %s312_s15  }
   0xe   : > { %p1942_p5 = por %p323_p2, %p322_p0  ;;  %p1946_p6 = por %p329_p4, %p328_p3 }
   0xf   : > { %2302 = sst [smem:[#allocation9_spill]] %s1940_s17  ;;  %p336_p8 = scmp.lt.s32.totalorder %s1818_s28, 3 }
  0x10   : > { %p1621_p9 = scmp.eq.s32.totalorder %s1925_s29, 0  ;;  %s2305_s7 = sld [smem:[#allocation11_spill]] }
  0x11   : > { %p337_p10 = pnand %p1533_p7, %p336_p8  ;;  %s1820_s23 = smov [#allocation2]  }
  0x12   : > { %s367_s24 = sshll.u32 %s1820_s23, 4  ;;  %s1821_s30 = smov 64   ;;  %s368_s24 = int_to_ptr.vmem [resolvable:$true] %s367_s24 }
  0x13   : > { %p1613_p11 = pneg %p337_p10  ;;  %s1822_s15 = smov 4  }
  0x14   : > { %405 = sbr.rel (%p337_p10) target bundleno = 2099 (0x833), region = 72 }
  0x15   : > { %p1614_p12 = pnand %p1621_p9, %p1613_p11 }
  0x16   : > { %s365_s22 = sshll.u32 %s2305_s7, 4  ;;  %s366_s22 = int_to_ptr.hbm [resolvable:$true] %s365_s22 }
  0x17   : > { %1616 = dma.hbm_to_vmem [thread:$0]  (!%p1614_p12), %s366_s22, 256, %s368_s24, [#allocation3], %s1821_s30, %s1821_s30, %s1822_s15  }
  0x19   : > { %1797 = dma.done.wait (%p1621_p9), [#allocation3], 256  }
  0x1a   : > { %1799 = vsyncadd (%p1621_p9), [#allocation3], 4294967040  ;;  %p449_p13 = scmp.lt.s32.totalorder %s1925_s29, 1  ;;  %s2306_s0 = sld [smem:[#allocation10_spill]]  ;;  %v1598_v0 = vld [vmem:[%s2285_s1 + $0x8] sm:$0xff]  ;;  %v1597_v1 = vld [vmem:[%s2285_s1] sm:$0xff] }
  0x1b   : > { %486 = vmatpush.bf16.msra.mxu0 %v1598_v0  ;;  %vm476_vm0 = vcmask 261120   ;;  %v1690_v4 = vld [vmem:[%s2286_s2] ss:$0 sm:$0xff]  ;;  %s1823_s27 = smov 104   ;;  %s1824_s17 = smov 120   ;;  %vm504_vm1 = vcmask 1047556  }
  0x1c   : > { %s450_s16 = scalar_select %p449_p13, %s1925_s29, 1  ;;  %v1827_v14 = vmov 1983009808   ;;  %v1828_v28 = vmov 1934713408   ;;  %vm870_vm2 = vcmask 64512  }
  0x1d   : > { %v509_v15 = vunpack.c.l.s4 %v1827_v14  ;;  %v533_v29 = vunpack.c.l.s4 %v1828_v28  ;;  %vm998_vm3 = vcmask 1043456   ;;  %s1830_s21 = smov 16   ;;  %s1831_s23 = smov 8   ;;  %vm1195_vm4 = vcmask 130048  }
  0x1e   : > { %s1539_s20 = sshll.u32 %s450_s16, 3  ;;  %s1826_s16 = smov 96   ;;  %vm1197_vm5 = vcmask 195584   ;;  %vm1394_vm14 = vcmask 523264  }
  0x1f   : > { %487 = vmatpush.bf16.msra.mxu0 %v1597_v1  ;;  %v1989_v19 = vunpack.c.0.s8 %v509_v15  ;;  %v1999_v34 = vunpack.c.0.s8 %v533_v29  ;;  %s1832_s22 = smov 24   ;;  %s446_s24 = sand.u32 1, %s1810_s26  }
  0x20   : > { %s452_s7 = scalar_lea.vmem %s2306_s0, %s1539_s20  ;;  %s1829_s20 = smov 64  }
  0x21   : > { %v1973_v2 = vld [vmem:[%s452_s7] sm:$0xff]  ;;  %s1825_s7 = smov 112   ;;  %s1538_s30 = sshll.u32 %s446_s24, 3 }
  0x22   : > { %v455_v3 = vpack.c.bf16 %v1973_v2, %v1973_v2  ;;  %s1594_s15 = sshll.u32 %s1925_s29, 3 }
  0x24   : > { %1548 = vmatmul.msk.bf16.vlgmr.msra.gmra.mxu0 %vm476_vm0, %v455_v3 }
  0xa1   : > { %v489_v5 = vpop.f32.mrf.mxu0 }
  0xa2   : > { %v490_v6 = vadd.f32 %v1690_v4, %v489_v5 }
  0xa4   : > { %500 = vrot.lane.b32.xlu1 %v490_v6, %s1823_s27  ;;  %494 = vrot.lane.b32.xlu0 %v490_v6, %s1824_s17  ;;  %v506_v16 = vrot.slane %v490_v6, 4  ;;  %s1446_s27 = scalar_lea.sflag [#allocation4], %s446_s24 }
  0xa9   : > { %v491_v7 = vpop.f32.mrf.mxu0 }
  0xac   : > { %497 = vrot.lane.b32.xlu0 %v490_v6, %s1825_s7 }
 0x116   : > { %v495_v8 = vpop.permute.xlu0 %494  ;;  %v501_v10 = vpop.permute.xlu1 %500 }
 0x117   : > { %v1981_v9 = vpack.i.bf16 %v495_v8, %v490_v6  ;;  %v516_v20 = vrot.slane %v501_v10, 4  ;;  %v518_v21 = vrot.slane %v495_v8, 4 }
 0x119   : > { %1671 = vrot.lane.b32.xlu1 %v1981_v9, %s1826_s16  ;;  %v517_v24 = vsel %vm504_vm1, %v516_v20, %v495_v8  ;;  %v519_v25 = vsel %vm504_vm1, %v501_v10, %v518_v21 }
 0x11a   : > { %v523_v30 = vperm.slane %v517_v24, %v1989_v19  ;;  %v527_v31 = vperm.slane %v519_v25, %v1989_v19 }
 0x11c   : > { %v528_v35 = vrot.slane %v523_v30, 4  ;;  %v540_v36 = vrot.slane %v527_v31, 4 }
 0x11e   : > { %v498_v11 = vpop.permute.xlu0 %497 }
 0x11f   : > { %v1984_v12 = vpack.i.bf16 %v501_v10, %v498_v11  ;;  %v503_v13 = vrot.slane %v498_v11, 4  ;;  %v507_v18 = vsel %vm504_vm1, %v498_v11, %v506_v16 }
 0x120   : > { %v515_v23 = vperm.slane %v507_v18, %v1989_v19 }
 0x121   : > { %1676 = vrot.lane.b32.xlu2 %v1984_v12, %s1826_s16  ;;  %v505_v17 = vsel %vm504_vm1, %v503_v13, %v490_v6 }
 0x122   : > { %v511_v22 = vperm.slane %v505_v17, %v1989_v19  ;;  %v542_v27 = vrot.slane %v515_v23, 4  ;;  %v541_v41 = vsel %vm504_vm1, %v540_v36, %v515_v23 }
 0x123   : > { %v547_v45 = vperm.slane %v541_v41, %v1999_v34 }
 0x124   : > { %v530_v26 = vrot.slane %v511_v22, 4  ;;  %v543_v33 = vsel %vm504_vm1, %v527_v31, %v542_v27  ;;  %v529_v40 = vsel %vm504_vm1, %v528_v35, %v511_v22 }
 0x125   : > { %v551_v38 = vperm.slane %v543_v33, %v1999_v34  ;;  %v535_v44 = vperm.slane %v529_v40, %v1999_v34  ;;  %v556_v55 = vrot.slane %v547_v45, 4 }
 0x126   : > { %v531_v32 = vsel %vm504_vm1, %v523_v30, %v530_v26 }
 0x127   : > { %v539_v37 = vperm.slane %v531_v32, %v1999_v34  ;;  %v558_v47 = vrot.slane %v551_v38, 4  ;;  %v552_v53 = vrot.slane %v535_v44, 4  ;;  %v557_v11 = vsel %vm504_vm1, 0.0, %v556_v55 }
 0x129   : > { %v554_v46 = vrot.slane %v539_v37, 4  ;;  %v559_v56 = vsel %vm504_vm1, 0.0, %v558_v47  ;;  %v571_v61 = vsel %vm504_vm1, %v558_v47, %v547_v45  ;;  %v553_v10 = vsel %vm504_vm1, 0.0, %v552_v53 }
 0x12a   : > { %v576_v1 = vrot.slane %v559_v56, 4  ;;  %v575_v18 = vperm.slane %v571_v61, %v1989_v19 }
 0x12b   : > { %v555_v54 = vsel %vm504_vm1, 0.0, %v554_v46  ;;  %v560_v13 = vsel %vm504_vm1, %v554_v46, %v535_v44 }
 0x12c   : > { %v565_v0 = vrot.slane %v555_v54, 4  ;;  %v577_v23 = vsel %vm504_vm1, %v576_v1, %v557_v11  ;;  %v564_v26 = vperm.slane %v560_v13, %v1989_v19  ;;  %v596_v40 = vrot.slane %v575_v18, 4 }
 0x12d   : > { %v581_v36 = vperm.slane %v577_v23, %v1989_v19 }
 0x12e   : > { %v566_v22 = vsel %vm504_vm1, %v565_v0, %v553_v10 }
 0x12f   : > { %v570_v31 = vperm.slane %v566_v22, %v1989_v19 }
 0x17b   : > { %v1677_v39 = vpop.permute.xlu2 %1676 }
 0x17c   : > { %v1679_v42 = vunpack.i.h.bf16 %v1677_v39  ;;  %v1678_v43 = vunpack.i.l.bf16 %v1677_v39  ;;  %v584_v39 = vrot.slane %v564_v26, 4 }
 0x17e   : > { %v642_v49 = vrot.slane %v1679_v42, 4  ;;  %v630_v50 = vrot.slane %v1678_v43, 4 }
 0x18b   : > { %v1672_v48 = vpop.permute.xlu1 %1671 }
 0x18c   : > { %v1674_v51 = vunpack.i.h.bf16 %v1672_v48  ;;  %v1673_v52 = vunpack.i.l.bf16 %v1672_v48  ;;  %v582_v48 = vrot.slane %v570_v31, 4 }
 0x18e   : > { %v644_v57 = vrot.slane %v1674_v51, 4  ;;  %v631_v58 = vsel %vm504_vm1, %v630_v50, %v1673_v52  ;;  %v632_v59 = vrot.slane %v1673_v52, 4  ;;  %v643_v60 = vsel %vm504_vm1, %v642_v49, %v1674_v51 }
 0x18f   : > { %v637_v62 = vperm.slane %v631_v58, %v1989_v19  ;;  %v649_v63 = vperm.slane %v643_v60, %v1989_v19  ;;  %v594_v52 = vrot.slane %v581_v36, 4  ;;  %v585_v58 = vsel %vm504_vm1, %v570_v31, %v584_v39 }
 0x190   : > { %v633_v3 = vsel %vm504_vm1, %v1678_v43, %v632_v59  ;;  %v645_v4 = vsel %vm504_vm1, %v1679_v42, %v644_v57  ;;  %v597_v60 = vsel %vm504_vm1, %v581_v36, %v596_v40  ;;  %v583_v61 = vsel %vm504_vm1, %v582_v48, %v564_v26 }
 0x191   : > { %v641_v5 = vperm.slane %v633_v3, %v1989_v19  ;;  %v653_v6 = vperm.slane %v645_v4, %v1989_v19  ;;  %v654_v7 = vrot.slane %v649_v63, 4  ;;  %v656_v8 = vrot.slane %v637_v62, 4 }
 0x192   : > { %v595_v1 = vsel %vm504_vm1, %v594_v52, %v575_v18  ;;  %v589_v10 = vperm.slane %v583_v61, %v1999_v34 }
 0x193   : > { %v655_v14 = vsel %vm504_vm1, %v654_v7, %v637_v62  ;;  %v657_v15 = vsel %vm504_vm1, %v649_v63, %v656_v8  ;;  %v666_v16 = vrot.slane %v653_v6, 4  ;;  %v668_v17 = vrot.slane %v641_v5, 4 }
 0x194   : > { %v661_v20 = vperm.slane %v655_v14, %v1999_v34  ;;  %v665_v21 = vperm.slane %v657_v15, %v1999_v34  ;;  %v605_v8 = vperm.slane %v597_v60, %v1999_v34 }
 0x195   : > { %v667_v24 = vsel %vm504_vm1, %v666_v16, %v641_v5  ;;  %v669_v25 = vsel %vm504_vm1, %v653_v6, %v668_v17  ;;  %v593_v6 = vperm.slane %v585_v58, %v1999_v34  ;;  %v601_v17 = vperm.slane %v595_v1, %v1999_v34 }
 0x196   : > { %v673_v27 = vperm.slane %v667_v24, %v1999_v34  ;;  %v677_v28 = vperm.slane %v669_v25, %v1999_v34  ;;  %v678_v29 = vrot.slane %v661_v20, 4  ;;  %v680_v30 = vrot.slane %v665_v21, 4 }
 0x197   : > { %v612_v22 = vrot.slane %v593_v6, 4 }
 0x198   : > { %v681_v32 = vsel %vm504_vm1, 0.0, %v680_v30  ;;  %v682_v33 = vrot.slane %v673_v27, 4  ;;  %v684_v35 = vrot.slane %v677_v28, 4  ;;  %v686_v37 = vsel %vm504_vm1, %v680_v30, %v661_v20 }
 0x199   : > { %v691_v38 = vrot.slane %v681_v32, 4  ;;  %v679_v41 = vsel %vm504_vm1, 0.0, %v678_v29  ;;  %v690_v43 = vperm.slane %v686_v37, %v1989_v19  ;;  %v610_v28 = vrot.slane %v605_v8, 4 }
 0x19a   : > { %v685_v42 = vsel %vm504_vm1, 0.0, %v684_v35  ;;  %v697_v44 = vsel %vm504_vm1, %v684_v35, %v673_v27  ;;  %v683_v49 = vsel %vm504_vm1, 0.0, %v682_v33  ;;  %v608_v27 = vrot.slane %v589_v10, 4 }
 0x19b   : > { %v702_v45 = vrot.slane %v685_v42, 4  ;;  %v692_v46 = vsel %vm504_vm1, %v691_v38, %v679_v41  ;;  %v701_v47 = vperm.slane %v697_v44, %v1989_v19  ;;  %v710_v51 = vrot.slane %v690_v43, 4 }
 0x19c   : > { %v696_v50 = vperm.slane %v692_v46, %v1989_v19  ;;  %v613_v32 = vsel %vm504_vm1, %v605_v8, %v612_v22  ;;  %v606_v33 = vrot.slane %v601_v17, 4  ;;  %v609_v36 = vsel %vm504_vm1, %v601_v17, %v608_v27 }
 0x19d   : > { %v703_v53 = vsel %vm504_vm1, %v702_v45, %v683_v49  ;;  %v722_v54 = vrot.slane %v701_v47, 4  ;;  %v611_v37 = vsel %vm504_vm1, %v610_v28, %v593_v6  ;;  %v617_v38 = vpack.c.bf16 %v613_v32, %v613_v32 }
 0x19e   : > { %v707_v55 = vperm.slane %v703_v53, %v1989_v19  ;;  %v711_v56 = vsel %vm504_vm1, %v696_v50, %v710_v51  ;;  %v708_v57 = vrot.slane %v696_v50, 4  ;;  %v607_v39 = vsel %vm504_vm1, %v606_v33, %v589_v10 }
 0x19f   : > { %v719_v59 = vperm.slane %v711_v56, %v1999_v34  ;;  %v615_v40 = vpack.c.bf16 %v609_v36, %v609_v36  ;;  %v616_v41 = vpack.c.bf16 %v611_v37, %v611_v37  ;;  %v614_v42 = vpack.c.bf16 %v607_v39, %v607_v39 }
 0x1a0   : > { %v723_v62 = vsel %vm504_vm1, %v707_v55, %v722_v54  ;;  %v709_v63 = vsel %vm504_vm1, %v708_v57, %v690_v43  ;;  %v720_v0 = vrot.slane %v707_v55, 4 }
 0x1a1   : > { %v731_v3 = vperm.slane %v723_v62, %v1999_v34  ;;  %v738_v4 = vrot.slane %v719_v59, 4  ;;  %v715_v5 = vperm.slane %v709_v63, %v1999_v34 }
 0x1a2   : > { %v721_v7 = vsel %vm504_vm1, %v720_v0, %v701_v47 }
 0x1a3   : > { %v739_v11 = vsel %vm504_vm1, %v731_v3, %v738_v4  ;;  %v727_v13 = vperm.slane %v721_v7, %v1999_v34  ;;  %v734_v14 = vrot.slane %v715_v5, 4  ;;  %v736_v15 = vrot.slane %v731_v3, 4 }
 0x1a4   : > { %v743_v16 = vpack.c.bf16 %v739_v11, %v739_v11 }
 0x1a5   : > { %v735_v18 = vsel %vm504_vm1, %v727_v13, %v734_v14  ;;  %v737_v20 = vsel %vm504_vm1, %v736_v15, %v719_v59  ;;  %v732_v21 = vrot.slane %v727_v13, 4 }
 0x1a6   : > { %v932_v23 = vsel %vm870_vm2, %v743_v16, 0  ;;  %v741_v24 = vpack.c.bf16 %v735_v18, %v735_v18  ;;  %v742_v25 = vpack.c.bf16 %v737_v20, %v737_v20 }
 0x1a7   : > { %941 = vmatpush.bf16.xpose.msrb.mxu0 %v932_v23  ;;  %v733_v26 = vsel %vm504_vm1, %v732_v21, %v715_v5 }
 0x1a8   : > { %v894_v29 = vsel %vm870_vm2, %v741_v24, 0  ;;  %v913_v30 = vsel %vm870_vm2, %v742_v25, 0  ;;  %v740_v31 = vpack.c.bf16 %v733_v26, %v733_v26 }
 0x1a9   : > { %903 = vmatpush.bf16.xpose.msra.mxu2 %v894_v29  ;;  %922 = vmatpush.bf16.xpose.msra.mxu3 %v913_v30 }
 0x1aa   : > { %v875_v35 = vsel %vm870_vm2, %v740_v31, 0 }
 0x1ab   : > { %884 = vmatpush.bf16.xpose.msra.mxu1 %v875_v35 }
 0x1ae   : > { %1552 = vmatmul.msk.bf16.vlgmr.msrb.gmra.mxu0 %vm870_vm2, %v617_v38 }
 0x1b0   : > { %1550 = vmatmul.msk.bf16.vlgmr.msra.gmra.mxu2 %vm870_vm2, %v615_v40  ;;  %1551 = vmatmul.msk.bf16.vlgmr.msra.gmra.mxu3 %vm870_vm2, %v616_v41 }
 0x1b2   : > { %1549 = vmatmul.msk.bf16.vlgmr.msra.gmra.mxu1 %vm870_vm2, %v614_v42 }
 0x22b   : > { %v943_v43 = vpop.f32.mrf.mxu0 }
 0x22c   : > { %v956_v44 = vsel %vm870_vm2, %v943_v43, -inf }
 0x22d   : > { %957 = vmax.xlane.f32.xlu2 %v956_v44 }
 0x22f   : > { %v886_v45 = vpop.f32.mrf.mxu1 }
 0x230   : > { %v947_v46 = vsel %vm870_vm2, %v886_v45, -inf }
 0x231   : > { %948 = vmax.xlane.f32.xlu1 %v947_v46 }
 0x233   : > { %v905_v47 = vpop.f32.mrf.mxu2  ;;  %v924_v48 = vpop.f32.mrf.mxu3 }
 0x234   : > { %v945_v49 = vpop.f32.mrf.mxu0  ;;  %v953_v50 = vsel %vm870_vm2, %v924_v48, -inf  ;;  %v950_v51 = vsel %vm870_vm2, %v905_v47, -inf }
 0x235   : > { %954 = vmax.xlane.f32.xlu2 %v953_v50  ;;  %951 = vmax.xlane.f32.xlu0 %v950_v51 }
 0x237   : > { %v888_v52 = vpop.f32.mrf.mxu1 }
 0x23b   : > { %v907_v53 = vpop.f32.mrf.mxu2  ;;  %v926_v54 = vpop.f32.mrf.mxu3 }
 0x249   : > { %1686 = vrot.lane.b32.xlu0 %v1984_v12, %s1829_s20 }
 0x24d   : > { %1681 = vrot.lane.b32.xlu2 %v1981_v9, %s1829_s20  ;;  %s1456_s20 = scalar_lea.hbm %s2297_s13, %s1594_s15 }
 0x24e   : > { %s1460_s0 = sshll.u32 %s1456_s20, 4  ;;  %s1461_s0 = int_to_ptr.hbm [resolvable:$true] %s1460_s0 }
 0x24f   : > { %s1766_s17 = sshra.s32 %s1461_s0, 4  ;;  %s1767_s17 = int_to_ptr.hbm [resolvable:$true] %s1766_s17 }
 0x250   : > { %s1768_s15 = scalar_lea.hbm %s1767_s17, 8  ;;  %p1773_p3 = scmp.lt.s32.totalorder %s1767_s17, %s2297_s13 }
 0x251   : > { %p1769_p0 = scmp.ne.s32.totalorder %s1767_s17, %s1768_s15 }
 0x253   : > { %p1770_p1 = pnand %p1769_p0, %p1942_p5 }
 0x255   : > { %p1771_p2 = pneg %p1770_p1 }
 0x2a0   : > { %v958_v55 = vpop.xlane.xlu2 %957 }
 0x2a1   : > { %v962_v56 = vsub.f32 %v943_v43, %v958_v55 }
 0x2a3   : > { %v969_v57 = vmul.f32 1.442695, %v962_v56 }
 0x2a4   : > { %v949_v12 = vpop.xlane.xlu1 %948 }
 0x2a5   : > { %1698 = vpow2.f32 %v969_v57  ;;  %v959_v9 = vsub.f32 %v886_v45, %v949_v12 }
 0x2a7   : > { %v963_v6 = vmul.f32 1.442695, %v959_v9 }
 0x2a8   : > { %v955_v58 = vpop.xlane.xlu2 %954  ;;  %v952_v59 = vpop.xlane.xlu0 %951 }
 0x2a9   : > { %v961_v60 = vsub.f32 %v924_v48, %v955_v58  ;;  %v960_v63 = vsub.f32 %v905_v47, %v952_v59 }
 0x2ab   : > { %v2085_v61 = vpop.eup %1698  ;;  %v967_v62 = vmul.f32 1.442695, %v961_v60  ;;  %v965_v1 = vmul.f32 1.442695, %v960_v63 }
 0x2ac   : > { %v980_v0 = vsel %vm870_vm2, %v2085_v61, 0.0 }
 0x2ad   : > { %1700 = vpow2.f32 %v967_v62  ;;  %981 = vadd.xlane.f32.xlu0 %v980_v0 }
 0x2ae   : > { %1702 = vpow2.f32 %v965_v1 }
 0x2af   : > { %1704 = vpow2.f32 %v963_v6 }
 0x2b0   : > { %v1682_v4 = vpop.permute.xlu2 %1681 }
 0x2b1   : > { %v1684_v7 = vunpack.i.h.bf16 %v1682_v4  ;;  %v1683_v8 = vunpack.i.l.bf16 %v1682_v4 }
 0x2b3   : > { %v2089_v3 = vpop.eup %1700  ;;  %v770_v11 = vrot.slane %v1684_v7, 4  ;;  %v758_v14 = vrot.slane %v1683_v8, 4 }
 0x2b4   : > { %v977_v5 = vsel %vm870_vm2, %v2089_v3, 0.0  ;;  %v2093_v10 = vpop.eup %1702 }
 0x2b5   : > { %978 = vadd.xlane.f32.xlu1 %v977_v5  ;;  %v974_v17 = vsel %vm870_vm2, %v2093_v10, 0.0  ;;  %v2103_v27 = vpop.eup %1704 }
 0x2b6   : > { %v971_v39 = vsel %vm870_vm2, %v2103_v27, 0.0 }
 0x2bb   : > { %v1687_v13 = vpop.permute.xlu0 %1686 }
 0x2bc   : > { %v1689_v15 = vunpack.i.h.bf16 %v1687_v13  ;;  %v1688_v16 = vunpack.i.l.bf16 %v1687_v13 }
 0x2bd   : > { %975 = vadd.xlane.f32.xlu1 %v974_v17 }
 0x2be   : > { %v768_v18 = vrot.slane %v1689_v15, 4  ;;  %v771_v20 = vsel %vm504_vm1, %v1689_v15, %v770_v11  ;;  %v756_v21 = vrot.slane %v1688_v16, 4  ;;  %v759_v22 = vsel %vm504_vm1, %v1688_v16, %v758_v14 }
 0x2bf   : > { %v779_v23 = vperm.slane %v771_v20, %v1989_v19  ;;  %v767_v24 = vperm.slane %v759_v22, %v1989_v19 }
 0x2c0   : > { %v769_v25 = vsel %vm504_vm1, %v768_v18, %v1684_v7  ;;  %v757_v26 = vsel %vm504_vm1, %v756_v21, %v1683_v8 }
 0x2c1   : > { %v775_v28 = vperm.slane %v769_v25, %v1989_v19  ;;  %v792_v29 = vrot.slane %v779_v23, 4  ;;  %v763_v30 = vperm.slane %v757_v26, %v1989_v19  ;;  %v794_v31 = vrot.slane %v767_v24, 4 }
 0x2c3   : > { %v780_v32 = vrot.slane %v775_v28, 4  ;;  %v782_v33 = vrot.slane %v763_v30, 4  ;;  %v793_v35 = vsel %vm504_vm1, %v792_v29, %v767_v24  ;;  %v795_v36 = vsel %vm504_vm1, %v779_v23, %v794_v31 }
 0x2c4   : > { %v799_v37 = vperm.slane %v793_v35, %v1999_v34  ;;  %v803_v38 = vperm.slane %v795_v36, %v1999_v34 }
 0x2c5   : > { %v781_v40 = vsel %vm504_vm1, %v780_v32, %v763_v30  ;;  %v783_v41 = vsel %vm504_vm1, %v775_v28, %v782_v33  ;;  %972 = vadd.xlane.f32.xlu1 %v971_v39 }
 0x2c6   : > { %v787_v42 = vperm.slane %v781_v40, %v1999_v34  ;;  %v791_v43 = vperm.slane %v783_v41, %v1999_v34  ;;  %v808_v44 = vrot.slane %v799_v37, 4  ;;  %v810_v45 = vrot.slane %v803_v38, 4 }
 0x2c8   : > { %v804_v46 = vrot.slane %v787_v42, 4  ;;  %v806_v47 = vrot.slane %v791_v43, 4  ;;  %v811_v48 = vsel %vm504_vm1, 0.0, %v810_v45  ;;  %v823_v49 = vsel %vm504_vm1, %v810_v45, %v799_v37 }
 0x2c9   : > { %v828_v50 = vrot.slane %v811_v48, 4  ;;  %v809_v52 = vsel %vm504_vm1, 0.0, %v808_v44  ;;  %v827_v54 = vperm.slane %v823_v49, %v1989_v19 }
 0x2ca   : > { %v807_v51 = vsel %vm504_vm1, 0.0, %v806_v47  ;;  %v812_v53 = vsel %vm504_vm1, %v806_v47, %v787_v42  ;;  %v805_v58 = vsel %vm504_vm1, 0.0, %v804_v46 }
 0x2cb   : > { %v817_v55 = vrot.slane %v807_v51, 4  ;;  %v816_v56 = vperm.slane %v812_v53, %v1989_v19  ;;  %v829_v57 = vsel %vm504_vm1, %v828_v50, %v809_v52  ;;  %v848_v60 = vrot.slane %v827_v54, 4 }
 0x2cc   : > { %v833_v59 = vperm.slane %v829_v57, %v1989_v19 }
 0x2cd   : > { %v818_v62 = vsel %vm504_vm1, %v817_v55, %v805_v58  ;;  %v836_v63 = vrot.slane %v816_v56, 4 }
 0x2ce   : > { %v822_v0 = vperm.slane %v818_v62, %v1989_v19  ;;  %v849_v1 = vsel %vm504_vm1, %v833_v59, %v848_v60  ;;  %v846_v12 = vrot.slane %v833_v59, 4 }
 0x2cf   : > { %v857_v9 = vperm.slane %v849_v1, %v1999_v34 }
 0x2d0   : > { %v837_v4 = vsel %vm504_vm1, %v822_v0, %v836_v63  ;;  %v834_v5 = vrot.slane %v822_v0, 4  ;;  %v847_v6 = vsel %vm504_vm1, %v846_v12, %v827_v54 }
 0x2d1   : > { %v845_v7 = vperm.slane %v837_v4, %v1999_v34  ;;  %v862_v8 = vrot.slane %v857_v9, 4  ;;  %v853_v11 = vperm.slane %v847_v6, %v1999_v34 }
 0x2d2   : > { %v835_v13 = vsel %vm504_vm1, %v834_v5, %v816_v56 }
 0x2d3   : > { %v863_v14 = vsel %vm504_vm1, %v862_v8, %v845_v7  ;;  %v864_v15 = vrot.slane %v845_v7, 4  ;;  %v841_v16 = vperm.slane %v835_v13, %v1999_v34  ;;  %v858_v17 = vrot.slane %v853_v11, 4 }
 0x2d4   : > { %v868_v18 = vpack.c.bf16 %v863_v14, %v863_v14 }
 0x2d5   : > { %v859_v20 = vsel %vm504_vm1, %v858_v17, %v841_v16  ;;  %v865_v21 = vsel %vm504_vm1, %v857_v9, %v864_v15  ;;  %v860_v22 = vrot.slane %v841_v16, 4 }
 0x2d6   : > { %v1038_v23 = vsel %vm998_vm3, %v868_v18, 0  ;;  %v866_v24 = vpack.c.bf16 %v859_v20, %v859_v20  ;;  %v869_v25 = vpack.c.bf16 %v865_v21, %v865_v21 }
 0x2d7   : > { %1047 = vmatpush.bf16.msrb.mxu3 %v1038_v23  ;;  %v861_v26 = vsel %vm504_vm1, %v853_v11, %v860_v22 }
 0x2d8   : > { %v1000_v28 = vsel %vm998_vm3, %v866_v24, 0  ;;  %v1057_v29 = vsel %vm998_vm3, %v869_v25, 0  ;;  %v867_v30 = vpack.c.bf16 %v861_v26, %v861_v26 }
 0x2d9   : > { %1009 = vmatpush.bf16.msrb.mxu1 %v1000_v28  ;;  %1066 = vmatpush.bf16.msra.mxu0 %v1057_v29 }
 0x2da   : > { %v1019_v31 = vsel %vm998_vm3, %v867_v30, 0 }
 0x2db   : > { %1028 = vmatpush.bf16.msrb.mxu2 %v1019_v31 }
 0x320   : > { %v982_v32 = vpop.xlane.xlu0 %981 }
 0x321   : > { %1706 = vrcp.f32 %v982_v32 }
 0x327   : > { %v1707_v33 = vpop.eup %1706 }
 0x328   : > { %v990_v35 = vmul.f32 %v1707_v33, %v2085_v61  ;;  %v979_v36 = vpop.xlane.xlu1 %978 }
 0x329   : > { %1708 = vrcp.f32 %v979_v36 }
 0x32a   : > { %v994_v37 = vpack.c.bf16 %v990_v35, %v990_v35 }
 0x32c   : > { %1556 = vmatmul.msk.bf16.vlgmr.msra.gmra.mxu0 %vm870_vm2, %v994_v37 }
 0x32f   : > { %v1709_v38 = vpop.eup %1708 }
 0x330   : > { %v989_v39 = vmul.f32 %v1709_v38, %v2089_v3  ;;  %v976_v40 = vpop.xlane.xlu1 %975 }
 0x331   : > { %1710 = vrcp.f32 %v976_v40 }
 0x332   : > { %v993_v41 = vpack.c.bf16 %v989_v39, %v989_v39 }
 0x334   : > { %1555 = vmatmul.msk.bf16.vlgmr.msrb.gmra.mxu3 %vm870_vm2, %v993_v41 }
 0x337   : > { %v1711_v42 = vpop.eup %1710 }
 0x338   : > { %v988_v43 = vmul.f32 %v1711_v42, %v2093_v10  ;;  %v973_v44 = vpop.xlane.xlu1 %972 }
 0x339   : > { %1712 = vrcp.f32 %v973_v44 }
 0x33a   : > { %v992_v45 = vpack.c.bf16 %v988_v43, %v988_v43 }
 0x33c   : > { %1554 = vmatmul.msk.bf16.vlgmr.msrb.gmra.mxu2 %vm870_vm2, %v992_v45 }
 0x33f   : > { %v1713_v61 = vpop.eup %1712 }
 0x340   : > { %v987_v46 = vmul.f32 %v1713_v61, %v2103_v27 }
 0x342   : > { %v991_v47 = vpack.c.bf16 %v987_v46, %v987_v46 }
 0x344   : > { %1553 = vmatmul.msk.bf16.vlgmr.msrb.gmra.mxu1 %vm870_vm2, %v991_v47 }
 0x3a9   : > { %v1068_v3 = vpop.f32.mrf.mxu0 }
 0x3aa   : > { %v1084_v50 = vrot.slane %v1068_v3, 4 }
 0x3b1   : > { %v1070_v48 = vpop.f32.mrf.mxu0 }
 0x3b7   : > { %v1049_v49 = vpop.f32.mrf.mxu3 }
 0x3b8   : > { %v1072_v53 = vrot.slane %v1049_v49, 4 }
 0x3bf   : > { %v1030_v51 = vpop.f32.mrf.mxu2  ;;  %v1051_v52 = vpop.f32.mrf.mxu3 }
 0x3c0   : > { %v1085_v10 = vsel %vm504_vm1, %v1084_v50, %v1030_v51  ;;  %v1086_v54 = vrot.slane %v1030_v51, 4 }
 0x3c1   : > { %v1091_v55 = vperm.slane %v1085_v10, %v1989_v19  ;;  %v1011_v56 = vpop.f32.mrf.mxu1 }
 0x3c2   : > { %v1087_v57 = vsel %vm504_vm1, %v1068_v3, %v1086_v54  ;;  %v1073_v27 = vsel %vm504_vm1, %v1072_v53, %v1011_v56  ;;  %v1074_v58 = vrot.slane %v1011_v56, 4  ;;  %v1599_v54 = vld [vmem:[%s2287_s3] sm:$0xff] }
 0x3c3   : > { %v1095_v59 = vperm.slane %v1087_v57, %v1989_v19  ;;  %v1096_v60 = vrot.slane %v1091_v55, 4  ;;  %v1079_v62 = vperm.slane %v1073_v27, %v1989_v19 }
 0x3c4   : > { %v1075_v63 = vsel %vm504_vm1, %v1049_v49, %v1074_v58 }
 0x3c5   : > { %v1108_v0 = vrot.slane %v1095_v59, 4  ;;  %v1083_v1 = vperm.slane %v1075_v63, %v1989_v19  ;;  %v1097_v12 = vsel %vm504_vm1, %v1096_v60, %v1079_v62  ;;  %v1098_v9 = vrot.slane %v1079_v62, 4  ;;  %v1691_v62 = vld [vmem:[%s2288_s4] ss:$0 sm:$0xff] }
 0x3c6   : > { %v1103_v4 = vperm.slane %v1097_v12, %v1999_v34 }
 0x3c7   : > { %v1099_v5 = vsel %vm504_vm1, %v1091_v55, %v1098_v9  ;;  %v1109_v6 = vsel %vm504_vm1, %v1108_v0, %v1083_v1  ;;  %v1110_v7 = vrot.slane %v1083_v1, 4  ;;  %v1032_v8 = vpop.f32.mrf.mxu2 }
 0x3c8   : > { %v1107_v11 = vperm.slane %v1099_v5, %v1999_v34  ;;  %v1115_v13 = vperm.slane %v1109_v6, %v1999_v34  ;;  %v1120_v17 = vrot.slane %v1103_v4, 4 }
 0x3c9   : > { %v1111_v14 = vsel %vm504_vm1, %v1095_v59, %v1110_v7  ;;  %v1013_v15 = vpop.f32.mrf.mxu1 }
 0x3ca   : > { %v1119_v16 = vperm.slane %v1111_v14, %v1999_v34  ;;  %v1122_v18 = vrot.slane %v1107_v11, 4  ;;  %v1124_v21 = vrot.slane %v1115_v13, 4  ;;  %v1121_v26 = vsel %vm504_vm1, 0.0, %v1120_v17 }
 0x3cc   : > { %v1123_v20 = vsel %vm504_vm1, 0.0, %v1122_v18  ;;  %v1126_v22 = vrot.slane %v1119_v16, 4  ;;  %v1128_v23 = vsel %vm504_vm1, %v1122_v18, %v1103_v4  ;;  %v1125_v33 = vsel %vm504_vm1, 0.0, %v1124_v21  ;;  %v1602_v18 = vld [vmem:[#allocation2 + $0x8] sm:$0xff] }
 0x3cd   : > { %v1133_v24 = vrot.slane %v1123_v20, 4  ;;  %v1132_v25 = vperm.slane %v1128_v23, %v1989_v19  ;;  %v1833_v4 = vmov 32.0   ;;  %1306 = vmatpush.bf16.msra.mxu2 %v1602_v18  ;;  %v1601_v20 = vld [vmem:[#allocation2] sm:$0xff] }
 0x3ce   : > { %v1127_v28 = vsel %vm504_vm1, 0.0, %v1126_v22  ;;  %v1139_v29 = vsel %vm504_vm1, %v1126_v22, %v1115_v13  ;;  %1714 = vrcp.f32 %v1833_v4 }
 0x3cf   : > { %v1144_v30 = vrot.slane %v1127_v28, 4  ;;  %v1134_v31 = vsel %vm504_vm1, %v1133_v24, %v1121_v26  ;;  %v1143_v32 = vperm.slane %v1139_v29, %v1989_v19  ;;  %v1152_v36 = vrot.slane %v1132_v25, 4 }
 0x3d0   : > { %v1138_v35 = vperm.slane %v1134_v31, %v1989_v19  ;;  %v1692_v31 = vld [vmem:[%s2289_s5] ss:$0 sm:$0xff] }
 0x3d1   : > { %v1145_v37 = vsel %vm504_vm1, %v1144_v30, %v1125_v33  ;;  %v1164_v38 = vrot.slane %v1143_v32, 4  ;;  %1307 = vmatpush.bf16.msra.mxu2 %v1601_v20  ;;  %v1693_v33 = vld [vmem:[%s2290_s6] ss:$0 sm:$0xff] }
 0x3d2   : > { %v1149_v39 = vperm.slane %v1145_v37, %v1989_v19  ;;  %v1150_v40 = vrot.slane %v1138_v35, 4  ;;  %v1153_v41 = vsel %vm504_vm1, %v1138_v35, %v1152_v36 }
 0x3d3   : > { %v1161_v47 = vperm.slane %v1153_v41, %v1999_v34 }
 0x3d4   : > { %v1165_v42 = vsel %vm504_vm1, %v1149_v39, %v1164_v38  ;;  %v1151_v43 = vsel %vm504_vm1, %v1150_v40, %v1132_v25  ;;  %v1162_v44 = vrot.slane %v1149_v39, 4  ;;  %v1715_v5 = vpop.eup %1714  ;;  %v1694_v39 = vld [vmem:[%s2292_s8] ss:$0 sm:$0xff] }
 0x3d5   : > { %v1173_v45 = vperm.slane %v1165_v42, %v1999_v34  ;;  %v1157_v61 = vperm.slane %v1151_v43, %v1999_v34  ;;  %v1180_v53 = vrot.slane %v1161_v47, 4  ;;  %v1243_v6 = vmul.f32 32.0, %v1715_v5 }
 0x3d6   : > { %v1163_v46 = vsel %vm504_vm1, %v1162_v44, %v1143_v32  ;;  %vm1247_vm6 = vweird.f32 %v1715_v5 }
 0x3d7   : > { %v1178_v3 = vrot.slane %v1173_v45, 4  ;;  %v1169_v48 = vperm.slane %v1163_v46, %v1999_v34  ;;  %v1176_v19 = vrot.slane %v1157_v61, 4  ;;  %v1181_v10 = vsel %vm504_vm1, %v1173_v45, %v1180_v53  ;;  %v1600_v34 = vld [vmem:[%s2287_s3 + $0x8] sm:$0xff] }
 0x3d8   : > { %1229 = vmatpush.bf16.msra.mxu1 %v1600_v34  ;;  %v1244_v7 = vsub.f32 1.0, %v1243_v6  ;;  %v1604_v53 = vld [vmem:[%s2293_s9 + $0x8] sm:$0xff] }
 0x3d9   : > { %v1179_v49 = vsel %vm504_vm1, %v1178_v3, %v1161_v47  ;;  %v1174_v50 = vrot.slane %v1169_v48, 4  ;;  %v1177_v51 = vsel %vm504_vm1, %v1169_v48, %v1176_v19  ;;  %v1605_v19 = vld [vmem:[%s2293_s9 + $0x10] sm:$0xff] }
 0x3da   : > { %1187 = vrot.lane.b32.xlu1 %v1179_v49, %s1830_s21  ;;  %1183 = vrot.lane.b32.xlu2 %v1177_v51, %s1831_s23  ;;  %v1245_v8 = vmul.f32 %v1715_v5, %v1244_v7 }
 0x3db   : > { %v1175_v52 = vsel %vm504_vm1, %v1174_v50, %v1157_v61  ;;  %v1606_v61 = vld [vmem:[%s2293_s9 + $0x18] sm:$0xff] }
 0x3dc   : > { %1230 = vmatpush.bf16.msra.mxu1 %v1599_v54  ;;  %v1246_v11 = vadd.f32 %v1715_v5, %v1245_v8  ;;  %1402 = vmatpush.bf16.msra.mxu3 %v1606_v61  ;;  %v1697_v61 = vld [vmem:[%s2296_s12] ss:$0 sm:$0xff] }
 0x3de   : > { %v2206_v13 = vsel %vm1247_vm6, %v1715_v5, %v1246_v11 }
 0x3e0   : > { %1403 = vmatpush.bf16.msra.mxu3 %v1605_v19 }
 0x3e2   : > { %1191 = vrot.lane.b32.xlu2 %v1181_v10, %s1832_s22  ;;  %s448_s22 = scalar_lea.vmem [#allocation5], %s1538_s30  ;;  %s1772_s30 = scalar_lea.hbm %s2297_s13, 16 }
 0x3e3   : > { %s1458_s29 = sshll.u32 %s448_s22, 4  ;;  %p1774_p4 = scmp.lt.s32.totalorder %s1772_s30, %s1768_s15  ;;  %s1459_s29 = int_to_ptr.vmem [resolvable:$true] %s1458_s29 }
 0x3e4   : > { %1404 = vmatpush.bf16.msra.mxu3 %v1604_v53 }
 0x3e5   : > { %p1775_p7 = por %p1774_p4, %p1773_p3 }
 0x3e7   : > { %p1776_p8 = pnand %p1775_p7, %p1771_p2 }
 0x434   : > { %v1184_v55 = vpop.permute.xlu2 %1183 }
 0x435   : > { %v1194_v56 = vsel %vm870_vm2, %v1175_v52, %v1184_v55  ;;  %v1603_v55 = vld [vmem:[%s2293_s9] sm:$0xff] }
 0x436   : > { %1405 = vmatpush.bf16.msra.mxu3 %v1603_v55 }
 0x43c   : > { %v1192_v27 = vpop.permute.xlu2 %1191 }
 0x44c   : > { %v1188_v57 = vpop.permute.xlu1 %1187 }
 0x44d   : > { %v1196_v58 = vsel %vm1195_vm4, %v1194_v56, %v1188_v57 }
 0x44e   : > { %v1198_v59 = vsel %vm1197_vm5, %v1196_v58, %v1192_v27 }
 0x44f   : > { %v1199_v60 = vpack.c.bf16 %v1198_v59, %v1198_v59 }
 0x451   : > { %1565 = vmatmul.msk.bf16.vlgmr.msra.gmra.mxu1 %vm476_vm0, %v1199_v60 }
 0x4ce   : > { %v1232_v63 = vpop.f32.mrf.mxu1 }
 0x4cf   : > { %v1233_v0 = vadd.f32 %v1691_v62, %v1232_v63 }
 0x4d1   : > { %v1236_v1 = vadd.f32 %v1233_v0, %v1973_v2 }
 0x4d3   : > { %v1239_v12 = vsel %vm476_vm0, %v1236_v1, 0.0 }
 0x4d4   : > { %1240 = vadd.xlane.f32.xlu2 %v1239_v12 }
 0x4d6   : > { %v1234_v9 = vpop.f32.mrf.mxu1 }
 0x547   : > { %v1241_v14 = vpop.xlane.xlu2 %1240 }
 0x548   : > { %v1249_v15 = vmul.f32 %v2206_v13, %v1241_v14 }
 0x54a   : > { %v1250_v16 = vsub.f32 %v1236_v1, %v1249_v15 }
 0x54c   : > { %v1251_v17 = vmul.f32 %v1250_v16, %v1250_v16 }
 0x54e   : > { %v1252_v2 = vsel %vm476_vm0, %v1251_v17, 0.0 }
 0x54f   : > { %1253 = vadd.xlane.f32.xlu1 %v1252_v2 }
 0x5c2   : > { %v1254_v21 = vpop.xlane.xlu1 %1253 }
 0x5c3   : > { %v1255_v22 = vmul.f32 %v1254_v21, %v2206_v13 }
 0x5c5   : > { %v1256_v23 = vadd.f32 1e-05, %v1255_v22  ;;  %v1695_v22 = vld [vmem:[%s2294_s10] ss:$0 sm:$0xff] }
 0x5c7   : > { %1716 = vrsqrt.f32 %v1256_v23  ;;  %vm1263_vm8 = vweird.f32 %v1256_v23 }
 0x5cd   : > { %v1717_v24 = vpop.eup %1716 }
 0x5ce   : > { %v1258_v25 = vmul.f32 %v1717_v24, %v1256_v23  ;;  %vm1264_vm7 = vweird.f32 %v1717_v24 }
 0x5cf   : > { %vm1265_vm9 = vmor %vm1263_vm8, %vm1264_vm7 }
 0x5d0   : > { %v1259_v26 = vmul.f32 %v1717_v24, %v1258_v25 }
 0x5d2   : > { %v1260_v28 = vmul.f32 0.5, %v1259_v26 }
 0x5d4   : > { %v1261_v29 = vsub.f32 1.5, %v1260_v28 }
 0x5d6   : > { %v1262_v30 = vmul.f32 %v1717_v24, %v1261_v29 }
 0x5d8   : > { %v1266_v32 = vsel %vm1265_vm9, %v1717_v24, %v1262_v30 }
 0x5d9   : > { %v1267_v35 = vmul.f32 %v1266_v32, %v1250_v16 }
 0x5db   : > { %v1271_v36 = vmul.f32 %v1692_v31, %v1267_v35 }
 0x5dd   : > { %v2217_v37 = vadd.f32 %v1693_v33, %v1271_v36 }
 0x5df   : > { %v1276_v38 = vpack.c.bf16 %v2217_v37, %v2217_v37 }
 0x5e1   : > { %1574 = vmatmul.msk.bf16.vlgmr.msra.gmra.mxu2 %vm476_vm0, %v1276_v38 }
 0x664   : > { %v1309_v40 = vpop.f32.mrf.mxu2 }
 0x665   : > { %v1310_v41 = vadd.f32 %v1694_v39, %v1309_v40 }
 0x667   : > { %v1314_v42 = vmul.f32 0.70710677, %v1310_v41  ;;  %v1313_v2 = vmul.f32 0.5, %v1310_v41 }
 0x669   : > { %v1315_v43 = vmul.f32 %v1314_v42, %v1314_v42 }
 0x66b   : > { %v1316_v44 = vmin.f32 %v1315_v43, 16.0 }
 0x66c   : > { %v1311_v45 = vpop.f32.mrf.mxu2 }
 0x66d   : > { %v1317_v46 = vmul.f32 2.1237322e-06, %v1316_v44  ;;  %v1328_v47 = vmul.f32 3.8918573e-05, %v1316_v44 }
 0x66f   : > { %v1318_v3 = vadd.f32 0.00028619796, %v1317_v46  ;;  %v1329_v48 = vadd.f32 0.001143296, %v1328_v47 }
 0x671   : > { %v1319_v49 = vmul.f32 %v1318_v3, %v1316_v44  ;;  %v1330_v50 = vmul.f32 %v1329_v48, %v1316_v44 }
 0x673   : > { %v1331_v51 = vadd.f32 0.014752088, %v1330_v50  ;;  %v1320_v52 = vadd.f32 0.0036580483, %v1319_v49 }
 0x675   : > { %v1332_v10 = vmul.f32 %v1331_v51, %v1316_v44  ;;  %v1321_v54 = vmul.f32 %v1320_v52, %v1316_v44 }
 0x677   : > { %v1333_v34 = vadd.f32 0.112945676, %v1332_v10  ;;  %v1322_v27 = vadd.f32 0.05243302, %v1321_v54 }
 0x679   : > { %v1334_v56 = vmul.f32 %v1333_v34, %v1316_v44  ;;  %v1323_v60 = vmul.f32 %v1322_v27, %v1316_v44 }
 0x67b   : > { %v1335_v57 = vadd.f32 0.4994258, %v1334_v56  ;;  %v1324_v62 = vadd.f32 0.18741608, %v1323_v60 }
 0x67d   : > { %v1336_v58 = vmul.f32 %v1335_v57, %v1316_v44  ;;  %v1325_v0 = vmul.f32 %v1324_v62, %v1316_v44  ;;  %v1696_v44 = vld [vmem:[%s2295_s11] ss:$0 sm:$0xff] }
 0x67f   : > { %v1337_v59 = vadd.f32 1.0, %v1336_v58  ;;  %v1326_v4 = vadd.f32 1.1283791, %v1325_v0 }
 0x681   : > { %1718 = vrcp.f32 %v1337_v59  ;;  %v1349_v9 = vand.u32 2147483648, %v1337_v59  ;;  %v1347_v6 = vand.u32 2147483647, %v1337_v59  ;;  %vm1343_vm11 = vweird.f32 %v1337_v59 }
 0x682   : > { %v1327_v11 = vmul.f32 %v1326_v4, %v1314_v42 }
 0x683   : > { %v1350_v8 = vor.u32 1.1754944e-38, %v1349_v9  ;;  %vm1348_vm13 = vcmp.eq.f32.partialorder %v1347_v6, 8.507059e+37 }
 0x687   : > { %v1719_v63 = vpop.eup %1718 }
 0x688   : > { %v1339_v1 = vmul.f32 %v1719_v63, %v1337_v59  ;;  %vm1344_vm10 = vweird.f32 %v1719_v63 }
 0x689   : > { %vm1345_vm12 = vmor %vm1343_vm11, %vm1344_vm10 }
 0x68a   : > { %v1340_v12 = vsub.f32 1.0, %v1339_v1 }
 0x68c   : > { %v1341_v5 = vmul.f32 %v1719_v63, %v1340_v12 }
 0x68e   : > { %v1342_v7 = vadd.f32 %v1719_v63, %v1341_v5 }
 0x690   : > { %v1346_v14 = vsel %vm1345_vm12, %v1719_v63, %v1342_v7 }
 0x691   : > { %v1351_v15 = vsel %vm1348_vm13, %v1350_v8, %v1346_v14 }
 0x692   : > { %v1352_v16 = vmul.f32 %v1351_v15, %v1327_v11 }
 0x694   : > { %v1575_v17 = vclamps-f32 %v1352_v16, 1.0 }
 0x696   : > { %v1355_v18 = vadd.f32 1.0, %v1575_v17 }
 0x698   : > { %v1356_v20 = vmul.f32 %v1355_v18, %v1313_v2 }
 0x69a   : > { %v1357_v21 = vpack.c.bf16 %v1356_v20, %v1356_v20 }
 0x69c   : > { %1592 = vmatmul.msk.bf16.vlgmr.msra.gmra.mxu3 %vm1394_vm14, %v1357_v21 }
 0x71f   : > { %v1407_v23 = vpop.f32.mrf.mxu3 }
 0x720   : > { %v1408_v24 = vadd.f32 %v1695_v22, %v1407_v23 }
 0x722   : > { %v1411_v25 = vadd.f32 %v1408_v24, %v2217_v37 }
 0x724   : > { %v1414_v26 = vsel %vm476_vm0, %v1411_v25, 0.0 }
 0x725   : > { %1415 = vadd.xlane.f32.xlu0 %v1414_v26 }
 0x727   : > { %v1409_v28 = vpop.f32.mrf.mxu3 }
 0x798   : > { %v1416_v29 = vpop.xlane.xlu0 %1415 }
 0x799   : > { %v1417_v30 = vmul.f32 %v1416_v29, %v2206_v13 }
 0x79b   : > { %v1418_v31 = vsub.f32 %v1411_v25, %v1417_v30 }
 0x79d   : > { %v1419_v32 = vmul.f32 %v1418_v31, %v1418_v31 }
 0x79f   : > { %v1420_v33 = vsel %vm476_vm0, %v1419_v32, 0.0 }
 0x7a0   : > { %1421 = vadd.xlane.f32.xlu0 %v1420_v33 }
 0x813   : > { %v1422_v35 = vpop.xlane.xlu0 %1421 }
 0x814   : > { %v1423_v36 = vmul.f32 %v1422_v35, %v2206_v13 }
 0x816   : > { %v1424_v38 = vadd.f32 1e-05, %v1423_v36 }
 0x818   : > { %1720 = vrsqrt.f32 %v1424_v38  ;;  %vm1431_vm1 = vweird.f32 %v1424_v38 }
 0x81e   : > { %v1721_v37 = vpop.eup %1720 }
 0x81f   : > { %v1426_v39 = vmul.f32 %v1721_v37, %v1424_v38  ;;  %vm1432_vm15 = vweird.f32 %v1721_v37 }
 0x820   : > { %vm1433_vm2 = vmor %vm1431_vm1, %vm1432_vm15 }
 0x821   : > { %v1427_v40 = vmul.f32 %v1721_v37, %v1426_v39 }
 0x823   : > { %v1428_v41 = vmul.f32 0.5, %v1427_v40 }
 0x825   : > { %v1429_v42 = vsub.f32 1.5, %v1428_v41 }
 0x827   : > { %v1430_v43 = vmul.f32 %v1721_v37, %v1429_v42 }
 0x829   : > { %v1434_v13 = vsel %vm1433_vm2, %v1721_v37, %v1430_v43 }
 0x82a   : > { %v1435_v45 = vmul.f32 %v1434_v13, %v1418_v31 }
 0x82c   : > { %v1439_v46 = vmul.f32 %v1696_v44, %v1435_v45 }
 0x82e   : > { %v1443_v47 = vadd.f32 %v1697_v61, %v1439_v46 }
 0x830   : > { %1444 = vst.msk [vmem:[%s448_s22] sm:$0xff] %vm476_vm0, %v1443_v47 }
 0x831   : > { %1779 = shalt.err (!%p1776_p8)
}
 0x832   : > { %1611 = dma.vmem_to_hbm [thread:$0]  (%p1942_p5), %s1459_s29, 128, %s1461_s0, %s1446_s27  }
 0x833 PF: > { %p1623_p9 = scmp.ge.s32.totalorder %s1818_s28, 2  ;;  %s1472_s24 = sand.u32 1, %s1806_s25  }
 0x834   : > { %s1473_s23 = scalar_lea.sflag [#allocation4], %s1472_s24 }
 0x835   : > { %p1618_p10 = pnand %p1623_p9, %p1946_p6 }
 0x837   : > { %p1619_p11 = pneg %p1618_p10 }
 0x839   : > { %1801 = dma.done.wait (%p1619_p11), %s1473_s23, 128  }
 0x83a   : > { %1803 = vsyncadd (%p1619_p11), %s1473_s23, 4294967168  ;;  %s2307_s22 = sld [smem:[#allocation8_spill]]  ;;  %p24_p12 = scmp.ge.s32.totalorder %s1929_s14, 4  }
 0x83b   : > { %s2308_s27 = sld [smem:[#allocation9_spill]]  ;;  %s2309_s25 = smov %s1810_s26 }
 0x83c   : > { %s2311_s28 = smov %s1929_s14  ;;  %26 = sbr.rel (!%p24_p12) target bundleno = 7 (0x7), region = 112 }
 0x840   : > { %s2310_s26 = smov %s2307_s22 }
 0x841   :  { %1479 = vsyncpa [#allocation3], 1 }
 0x842   :  { %1481 = vsyncpa [#allocation3 + $0x1], 1 }
 0x843   :  { %1482 = vsyncpa [#allocation4], 1 }
 0x844   :  { %1484 = vsyncpa [#allocation4 + $0x1], 1 }

</bundles_post_ra>
